<compile_context>
chip_gen: v7x
topology: tpu7x:2x2x1
jax: 0.10.0
libtpu: 0.0.40
codegen_flags: <defaults>
</compile_context>

<pallas_src>
import jax
import jax.numpy as jnp
from jax.experimental import pallas as pl
from jax.experimental.pallas import tpu as pltpu


# ---------------------------------------------------------------------------
# Kernel
# ---------------------------------------------------------------------------
def _edge_partitioner_kernel(xt_ref, w1_ref, b1_ref, w2_ref, b2_ref,
                             w3_ref, b3_ref, o_ref):
    # xt : (d_in, tile_m)              edge features, edges on the lane axis
    # w1 : (hidden, d_in)   b1: (hidden, 1)    (PyTorch nn.Linear (out, in) layout)
    # w2 : (hidden, hidden) b2: (hidden, 1)
    # w3 : (1, hidden)      b3: (1,) scalar in SMEM
    # o  : (1, tile_m)                 lane-dense output row
    xt = xt_ref[...]
    h1 = jnp.dot(w1_ref[...], xt, preferred_element_type=jnp.float32) + b1_ref[...]
    h1 = jnp.maximum(h1, 0.0)                                   # ReLU
    h2 = jnp.dot(w2_ref[...], h1, preferred_element_type=jnp.float32) + b2_ref[...]
    h2 = jnp.maximum(h2, 0.0)                                   # ReLU
    y = jnp.dot(w3_ref[...], h2, preferred_element_type=jnp.float32)  # (1, tile_m)
    o_ref[...] = jnp.tanh(y + b3_ref[0]).astype(o_ref.dtype)    # Tanh, lane-dense


# ---------------------------------------------------------------------------
# Tiling heuristics
# ---------------------------------------------------------------------------
def _cdiv(a, b):
    return -(-a // b)


def _round_up(a, b):
    return _cdiv(a, b) * b


def _vmem_bytes_per_col(d_in, hidden):
    """f32 VMEM bytes per edge (per lane column), sublane-padding aware.

    Covers: double-buffered x^T tile, h1/h2 temporaries (+1 copy of slack for
    compiler temporaries) and the double-buffered 8-sublane-padded output row.
    """
    return 4 * (2 * _round_up(d_in, 8) + 3 * _round_up(hidden, 8) + 2 * 8)


def _device_plan():
    """Heuristic (num_tensorcores, vmem_budget_bytes) per TPU generation."""
    kind = ""
    try:
        kind = jax.devices()[0].device_kind.lower()
    except Exception:  # pragma: no cover - be robust on exotic backends
        pass
    if ("v7" in kind) or ("7x" in kind):
        return 2, 20 << 20      # v7x: 2 TCs/chip, 64 MiB physical VMEM -> headroom
    return 1, 24 << 20          # v5e/v6e: 1 TC, 128 MiB physical VMEM


def _choose_tile_m(n, d_in, hidden, *, max_tile=4096,
                   vmem_budget_bytes=24 << 20, num_cores=1):
    """Lane-aligned (multiple of 128) row-tile size."""
    per_col = _vmem_bytes_per_col(d_in, hidden)
    budget_cols = max(128, (vmem_budget_bytes - (1 << 20)) // per_col)
    cap = max(128, min(max_tile, (budget_cols // 128) * 128))
    n128 = _round_up(n, 128)

    if num_cores <= 1:
        # Single TensorCore: the grid is a serial loop -> one big tile if it fits.
        return int(min(cap, n128))

    if n128 < num_cores * 128:
        return 128  # too little work to shard further

    # Multi-TensorCore: pick the step count first (multiple of num_cores, and
    # >= 2 steps per core when there is enough work so DMA pipelining overlaps),
    # then derive the tile size from it.
    min_tiles = 2 * num_cores if n128 >= 2 * num_cores * 128 else num_cores
    n_tiles = max(min_tiles, _cdiv(n128, cap))
    n_tiles = _round_up(n_tiles, num_cores)
    tile = _round_up(_cdiv(n, n_tiles), 128)
    return int(max(128, min(cap, tile)))


# ---------------------------------------------------------------------------
# Wrapper
# ---------------------------------------------------------------------------
def edge_partitioner_forward(edge_feat, params, *, tile_m=None):
    """edge_feat: (N, input_dim) float32 -> PyTorch-style .squeeze()'d predictions."""
    w1, b1, w2, b2, w3, b3 = params
    n, d_in = edge_feat.shape
    hidden = w1.shape[0]

    num_cores, vmem_budget = _device_plan()
    if tile_m is None:
        tile_m = _choose_tile_m(n, d_in, hidden,
                                vmem_budget_bytes=vmem_budget,
                                num_cores=num_cores)

    n_tiles = int(pl.cdiv(n, tile_m))
    n_pad = n_tiles * tile_m

    # One tiny wrapper-side transpose to the (d_in, N) layout; pad only on the
    # lane axis up to the 128-aligned tile grid (padded columns are sliced off).
    x_t = edge_feat.T
    if n_pad != n:
        x_t = jnp.pad(x_t, ((0, 0), (0, n_pad - n)))

    est_bytes = _vmem_bytes_per_col(d_in, hidden) * tile_m + (1 << 20)
    vmem_limit = int(min(28 << 20, max(16 << 20, 2 * est_bytes)))

    out = pl.pallas_call(
        _edge_partitioner_kernel,
        out_shape=jax.ShapeDtypeStruct((1, n_pad), edge_feat.dtype),
        grid_spec=pltpu.PrefetchScalarGridSpec(
            num_scalar_prefetch=0,
            grid=(n_tiles,),
            in_specs=[
                pl.BlockSpec((d_in, tile_m), lambda i: (0, i)),     # x^T tile
                pl.BlockSpec((hidden, d_in), lambda i: (0, 0)),     # W1 (out, in)
                pl.BlockSpec((hidden, 1), lambda i: (0, 0)),        # b1 column
                pl.BlockSpec((hidden, hidden), lambda i: (0, 0)),   # W2 (out, in)
                pl.BlockSpec((hidden, 1), lambda i: (0, 0)),        # b2 column
                pl.BlockSpec((1, hidden), lambda i: (0, 0)),        # W3 (1, hidden)
                pl.BlockSpec(memory_space=pltpu.MemorySpace.SMEM),  # b3 scalar
            ],
            out_specs=pl.BlockSpec((1, tile_m), lambda i: (0, i)),  # lane-dense
        ),
        compiler_params=pltpu.CompilerParams(
            dimension_semantics=("parallel",),
            vmem_limit_bytes=vmem_limit),
    )(x_t, w1, b1, w2, b2, w3, b3)

    # Lane-dense (1, n_pad) slab -> (N,), drop padding, then match PyTorch's
    # .squeeze() (becomes a 0-d scalar when N == 1).
    return jnp.squeeze(out.reshape(n_pad)[:n])


# ---------------------------------------------------------------------------
# Parameters (PyTorch nn.Linear layout) + reference
# ---------------------------------------------------------------------------
def init_params(key, input_dim, hidden_dim):
    """Deterministic synthetic init (uniform, like nn.Linear's default range)."""
    ks = jax.random.split(key, 6)

    def uniform(k, shape, fan_in):
        bound = 1.0 / jnp.sqrt(jnp.float32(fan_in))
        return jax.random.uniform(k, shape, jnp.float32, -bound, bound)

    w1 = uniform(ks[0], (hidden_dim, input_dim), input_dim)     # (out, in)
    b1 = uniform(ks[1], (hidden_dim, 1), input_dim)             # column bias
    w2 = uniform(ks[2], (hidden_dim, hidden_dim), hidden_dim)   # (out, in)
    b2 = uniform(ks[3], (hidden_dim, 1), hidden_dim)            # column bias
    w3 = uniform(ks[4], (1, hidden_dim), hidden_dim)            # (out=1, in)
    b3 = uniform(ks[5], (1,), hidden_dim)                       # SMEM scalar
    return (w1, b1, w2, b2, w3, b3)


def _reference(edge_feat, params):
    w1, b1, w2, b2, w3, b3 = params
    h1 = jnp.maximum(edge_feat @ w1.T + b1[:, 0], 0.0)
    h2 = jnp.maximum(h1 @ w2.T + b2[:, 0], 0.0)
    return jnp.squeeze(jnp.tanh(h2 @ w3.T + b3))


if __name__ == "__main__":
    input_dim, hidden_dim = 16, 32
    n_edges = 300  # not a multiple of 128 -> exercises the cdiv + padding path

    key = jax.random.PRNGKey(0)
    k_x, k_p = jax.random.split(key)
    edge_feat = jax.random.normal(k_x, (n_edges, input_dim), dtype=jnp.float32)
    params = init_params(k_p, input_dim, hidden_dim)

    out = jax.block_until_ready(edge_partitioner_forward(edge_feat, params))

    ref = _reference(edge_feat, params)
    assert out.shape == (n_edges,), out.shape
    # Tolerance covers possible bf16-pass MXU rounding in either the kernel or
    # the XLA reference matmuls; a layout/bias bug would be orders larger.
    assert jnp.allclose(out, ref, atol=2e-3, rtol=2e-3), float(
        jnp.max(jnp.abs(out - ref)))

    print("KERNEL_OK")
</pallas_src>

<mosaic_0001>
module attributes {stable_mosaic.version = 11 : i64} {
  func.func @_edge_partitioner_kernel(%arg0: i32, %arg1: memref<16x384xf32, #tpu.memory_space<vmem>>, %arg2: memref<32x16xf32, #tpu.memory_space<vmem>>, %arg3: memref<32x1xf32, #tpu.memory_space<vmem>>, %arg4: memref<32x32xf32, #tpu.memory_space<vmem>>, %arg5: memref<32x1xf32, #tpu.memory_space<vmem>>, %arg6: memref<1x32xf32, #tpu.memory_space<vmem>>, %arg7: memref<1xf32, #tpu.memory_space<smem>>, %arg8: memref<1x384xf32, #tpu.memory_space<vmem>>) attributes {dimension_semantics = [#tpu.dimension_semantics<parallel>], iteration_bounds = array<i64: 1>, scalar_prefetch = 0 : i64, scratch_operands = 0 : i64, tpu.core_type = #tpu.core_type<tc>, window_params = [{transform_indices = @transform_0, window_bounds = array<i64: 16, 384>}, {pipeline_mode = #tpu.pipeline_mode<synchronous>, transform_indices = @transform_1, window_bounds = array<i64: 32, 16>}, {pipeline_mode = #tpu.pipeline_mode<synchronous>, transform_indices = @transform_2, window_bounds = array<i64: 32, 1>}, {pipeline_mode = #tpu.pipeline_mode<synchronous>, transform_indices = @transform_3, window_bounds = array<i64: 32, 32>}, {pipeline_mode = #tpu.pipeline_mode<synchronous>, transform_indices = @transform_4, window_bounds = array<i64: 32, 1>}, {pipeline_mode = #tpu.pipeline_mode<synchronous>, transform_indices = @transform_5, window_bounds = array<i64: 1, 32>}, {transform_indices = @transform_6, window_bounds = array<i64: 1>}, {transform_indices = @transform_7, window_bounds = array<i64: 1, 384>}]} {
    %c0 = arith.constant 0 : index
    %c0_0 = arith.constant 0 : index
    %0 = vector.load %arg1[%c0, %c0_0] : memref<16x384xf32, #tpu.memory_space<vmem>>, vector<16x384xf32>
    %c0_1 = arith.constant 0 : index
    %c0_2 = arith.constant 0 : index
    %1 = vector.load %arg2[%c0_1, %c0_2] : memref<32x16xf32, #tpu.memory_space<vmem>>, vector<32x16xf32>
    %cst = arith.constant dense<0.000000e+00> : vector<32x384xf32>
    %2 = tpu.matmul %1, %0, %cst {dimension_numbers = #tpu.dot_dimension_numbers<[1], [0], [0], [1], [0, 0, 1, 1], [], []>} : vector<32x16xf32>, vector<16x384xf32>, vector<32x384xf32> -> vector<32x384xf32>
    %c0_3 = arith.constant 0 : index
    %c0_4 = arith.constant 0 : index
    %3 = vector.load %arg3[%c0_3, %c0_4] : memref<32x1xf32, #tpu.memory_space<vmem>>, vector<32x1xf32>
    %4 = vector.broadcast %3 : vector<32x1xf32> to vector<32x384xf32>
    %5 = arith.addf %2, %4 : vector<32x384xf32>
    %cst_5 = arith.constant 0.000000e+00 : f32
    %6 = vector.broadcast %cst_5 : f32 to vector<32x384xf32>
    %7 = arith.maximumf %5, %6 : vector<32x384xf32>
    %c0_6 = arith.constant 0 : index
    %c0_7 = arith.constant 0 : index
    %8 = vector.load %arg4[%c0_6, %c0_7] : memref<32x32xf32, #tpu.memory_space<vmem>>, vector<32x32xf32>
    %cst_8 = arith.constant dense<0.000000e+00> : vector<32x384xf32>
    %9 = tpu.matmul %8, %7, %cst_8 {dimension_numbers = #tpu.dot_dimension_numbers<[1], [0], [0], [1], [0, 0, 1, 1], [], []>} : vector<32x32xf32>, vector<32x384xf32>, vector<32x384xf32> -> vector<32x384xf32>
    %c0_9 = arith.constant 0 : index
    %c0_10 = arith.constant 0 : index
    %10 = vector.load %arg5[%c0_9, %c0_10] : memref<32x1xf32, #tpu.memory_space<vmem>>, vector<32x1xf32>
    %11 = vector.broadcast %10 : vector<32x1xf32> to vector<32x384xf32>
    %12 = arith.addf %9, %11 : vector<32x384xf32>
    %cst_11 = arith.constant 0.000000e+00 : f32
    %13 = vector.broadcast %cst_11 : f32 to vector<32x384xf32>
    %14 = arith.maximumf %12, %13 : vector<32x384xf32>
    %c0_12 = arith.constant 0 : index
    %c0_13 = arith.constant 0 : index
    %15 = vector.load %arg6[%c0_12, %c0_13] : memref<1x32xf32, #tpu.memory_space<vmem>>, vector<1x32xf32>
    %cst_14 = arith.constant dense<0.000000e+00> : vector<1x384xf32>
    %16 = tpu.matmul %15, %14, %cst_14 {dimension_numbers = #tpu.dot_dimension_numbers<[1], [0], [0], [1], [0, 0, 1, 1], [], []>} : vector<1x32xf32>, vector<32x384xf32>, vector<1x384xf32> -> vector<1x384xf32>
    %c0_15 = arith.constant 0 : index
    %17 = memref.load %arg7[%c0_15] : memref<1xf32, #tpu.memory_space<smem>>
    %18 = vector.broadcast %17 : f32 to vector<1x384xf32>
    %19 = arith.addf %16, %18 : vector<1x384xf32>
    %20 = math.tanh %19 : vector<1x384xf32>
    %c0_16 = arith.constant 0 : index
    %c0_17 = arith.constant 0 : index
    %21 = vector.load %arg8[%c0_16, %c0_17] : memref<1x384xf32, #tpu.memory_space<vmem>>, vector<1x384xf32>
    tpu.vector_store %arg8[%c0_16, %c0_17], %20 {strides = array<i32>} : memref<1x384xf32, #tpu.memory_space<vmem>>, vector<1x384xf32>,
    return
  }
  func.func @transform_0(%arg0: i32) -> (i32, i32) {
    %c0_i32 = arith.constant 0 : i32
    %c0_i32_0 = arith.constant 0 : i32
    return %c0_i32, %arg0 : i32, i32
  }
  func.func @transform_1(%arg0: i32) -> (i32, i32) {
    %c0_i32 = arith.constant 0 : i32
    %c0_i32_0 = arith.constant 0 : i32
    %c0_i32_1 = arith.constant 0 : i32
    return %c0_i32, %c0_i32_0 : i32, i32
  }
  func.func @transform_2(%arg0: i32) -> (i32, i32) {
    %c0_i32 = arith.constant 0 : i32
    %c0_i32_0 = arith.constant 0 : i32
    %c0_i32_1 = arith.constant 0 : i32
    return %c0_i32, %c0_i32_0 : i32, i32
  }
  func.func @transform_3(%arg0: i32) -> (i32, i32) {
    %c0_i32 = arith.constant 0 : i32
    %c0_i32_0 = arith.constant 0 : i32
    %c0_i32_1 = arith.constant 0 : i32
    return %c0_i32, %c0_i32_0 : i32, i32
  }
  func.func @transform_4(%arg0: i32) -> (i32, i32) {
    %c0_i32 = arith.constant 0 : i32
    %c0_i32_0 = arith.constant 0 : i32
    %c0_i32_1 = arith.constant 0 : i32
    return %c0_i32, %c0_i32_0 : i32, i32
  }
  func.func @transform_5(%arg0: i32) -> (i32, i32) {
    %c0_i32 = arith.constant 0 : i32
    %c0_i32_0 = arith.constant 0 : i32
    %c0_i32_1 = arith.constant 0 : i32
    return %c0_i32, %c0_i32_0 : i32, i32
  }
  func.func @transform_6(%arg0: i32) -> i32 {
    %c0_i32 = arith.constant 0 : i32
    %c0_i32_0 = arith.constant 0 : i32
    return %c0_i32 : i32
  }
  func.func @transform_7(%arg0: i32) -> (i32, i32) {
    %c0_i32 = arith.constant 0 : i32
    %c0_i32_0 = arith.constant 0 : i32
    return %c0_i32, %arg0 : i32, i32
  }
}

</mosaic_0001>

<bundles_post_ra>
// kernel: tpu_custom_call.1
= control target key start
LH: loop header
LB: loop body
LE: loop exit
PB: predicated region body
PF: predicated region fallthrough
CT: control target
= control target key end

     0   :  { %vm62_vm0 = vcmask 130048   ;;  %v832_v7 = vmov 0.0   ;;  %v833_v8 = vmov 0   ;;  %s994_s0 = inlined_call_operand.vmem [shape: f32[16,384], index: 0, kind: input, shape index: {}]   ;;  %s995_s1 = inlined_call_operand.vmem [shape: f32[32,16], index: 1, kind: input, shape index: {}]   ;;  %s996_s2 = inlined_call_operand.vmem [shape: f32[32,1], index: 2, kind: input, shape index: {}]   ;;  %s997_s3 = inlined_call_operand.vmem [shape: f32[32,32], index: 3, kind: input, shape index: {}]   ;;  %s998_s4 = inlined_call_operand.vmem [shape: f32[32,1], index: 4, kind: input, shape index: {}]   ;;  %s999_s5 = inlined_call_operand.vmem [shape: f32[1,32], index: 5, kind: input, shape index: {}]   ;;  %s1000_s6 = inlined_call_operand.<no memory space> [shape: f32[1], index: 6, kind: input, shape index: {}]   ;;  %s1001_s7 = inlined_call_operand.hbm [shape: f32[1,384], index: 7, kind: output, shape index: {}]  }
   0x1   :  { %v29_v0 = vld [vmem:[%s994_s0 + $0x8] sm:$0xff]  ;;  %v32_v1 = vld [vmem:[%s994_s0 + $0x20] sm:$0xff]  ;;  %v30_v2 = vld [vmem:[%s994_s0 + $0x10] sm:$0xff]  ;;  %139 = vmatprep.mubr.f32.mxu0 %v832_v7  ;;  %800 = vset.pattern.permute.xlu0 %v833_v8 }
   0x2   :  { %v756_v3 = vpack.c.bf16 %v32_v1, %v29_v0  ;;  %v33_v4 = vld [vmem:[%s994_s0 + $0x28] sm:$0xff]  ;;  %v28_v5 = vld [vmem:[%s994_s0] sm:$0xff]  ;;  %v31_v6 = vld [vmem:[%s994_s0 + $0x18] sm:$0xff]  ;;  %801 = vset.pattern.permute.xlu1 %v833_v8 }
   0x3   :  { %v760_v9 = vpack.c.bf16 %v33_v4, %v30_v2  ;;  %v758_v10 = vpack.c.bf16 %v31_v6, %v28_v5  ;;  %v34_v11 = vld [vmem:[%s995_s1] sm:$0xff]  ;;  %v40_v13 = vld [vmem:[%s996_s2 + $0x10] sm:$0xff]  ;;  %v35_v14 = vld [vmem:[%s995_s1 + $0x8] sm:$0xff] }
   0x4   :  { %757 = vmatprep.subr.bf16.mxu0 %v756_v3  ;;  %725 = vmatprep.mubr.msk.f32.mxu1 %vm62_vm0, %v34_v11  ;;  %v38_v12 = vld [vmem:[%s996_s2] sm:$0xff]  ;;  %v36_v15 = vld [vmem:[%s995_s1 + $0x10] sm:$0xff]  ;;  %v39_v16 = vld [vmem:[%s996_s2 + $0x8] sm:$0xff] }
   0x5   :  { %761 = vmatprep.subr.bf16.mxu1 %v760_v9  ;;  %759 = vmatpush1.bf16.msra.mxu0 %v758_v10 }
   0x6   :  { %763 = vmatpush3.bf16.msra.mxu1 %v760_v9  ;;  %44 = vperm.xlu0 %800, %v38_v12  }
   0x7   :  { %54 = vperm.xlu1 %801, %v40_v13  }
   0x8   :  { %13 = vsyncpa [#allocation4], 0  ;;  %684 = vmatmul.mubr.msk.f32.vlgmr.msra.gmra.mrb[0].mxu0 %vm62_vm0, %v34_v11  ;;  %v41_v17 = vld [vmem:[%s996_s2 + $0x18] sm:$0xff]  ;;  %v265_v19 = vld [vmem:[%s998_s4] sm:$0xff]  ;;  %vm289_vm1 = vcmask 261120   ;;  %v834_v10 = vmov 0.0|0.0  }
   0x9   :  { %726 = vmatmul.mubr.msk.f32.vlgmr.msra.gmra.mrb[0].mxu1 %vm62_vm0, %v35_v14  ;;  %145 = vmatprep.mubr.f32.mxu0 %v832_v7  ;;  %v37_v18 = vld [vmem:[%s995_s1 + $0x18] sm:$0xff]  ;;  %v266_v20 = vld [vmem:[%s998_s4 + $0x8] sm:$0xff]  ;;  %v267_v21 = vld [vmem:[%s998_s4 + $0x10] sm:$0xff]  ;;  %vm835_vm2 = vmmov 0  }
   0xa   :  { %728 = vmatprep.mubr.msk.f32.mxu1 %vm62_vm0, %v36_v15  ;;  %49 = vperm.xlu0 %800, %v39_v16   ;;  %v268_v22 = vld [vmem:[%s998_s4 + $0x18] sm:$0xff]  ;;  %v948_v23 = vld [vmem:[%s997_s3] sm:$0xff]  ;;  %v262_v0 = vld [vmem:[%s997_s3 + $0x8] sm:$0xff] }
   0xb   :  { %59 = vperm.xlu1 %801, %v41_v17   ;;  %v263_v3 = vld [vmem:[%s997_s3 + $0x10] sm:$0xff]  ;;  %v264_v9 = vld [vmem:[%s997_s3 + $0x18] sm:$0xff] }
   0xc   :  { %685 = vmatmul.mubr.msk.f32.gmra.mrb[2].mxu0 %vm62_vm0, %v35_v14 }
   0xd   :  { %729 = vmatmul.mubr.msk.f32.gmra.mrb[2].mxu1 %vm62_vm0, %v37_v18  ;;  %151 = vmatprep.mubr.f32.mxu0 %v832_v7 }
   0xe   :  { %271 = vperm.xlu0 %800, %v265_v19   ;;  %366 = vmatprep.mubr.f32.mxu1 %v832_v7 }
   0xf   :  { %276 = vperm.xlu1 %801, %v266_v20  }
  0x10   :  { %686 = vmatmul.mubr.msk.f32.gmra.mrb[4].mxu0 %vm62_vm0, %v36_v15 }
  0x11   :  { %157 = vmatprep.mubr.f32.mxu0 %v832_v7 }
  0x12   :  { %281 = vperm.xlu0 %800, %v267_v21  }
  0x13   :  { %286 = vperm.xlu1 %801, %v268_v22  }
  0x14   :  { %687 = vmatmul.mubr.msk.f32.gmra.mrb[6].mxu0 %vm62_vm0, %v37_v18 }
  0x15   :  { %739 = vmatprep.mubr.msk.f32.mxu0 %vm289_vm1, %v948_v23 }
  0x85   :  { %v45_v24 = vpop.permute.xlu0 %44 }
  0x86   :  { %v55_v25 = vpop.permute.xlu1 %54 }
  0x89   :  { %v50_v26 = vpop.permute.xlu0 %49 }
  0x8a   :  { %v60_v35 = vpop.permute.xlu1 %59 }
  0x8d   :  { %v272_v12 = vpop.permute.xlu0 %271 }
  0x8e   :  { %v277_v11 = vpop.permute.xlu1 %276 }
  0x91   :  { %v282_v21 = vpop.permute.xlu0 %281 }
  0x92   :  { %v287_v18 = vpop.permute.xlu1 %286 }
  0xdb   :  { %v141_v27 = vpop.f32.mrb[0].mxu0 }
  0xdc   :  { %v727_v28 = vpop.f32.mrb[0].mxu1  ;;  %v143_v29 = vpop.f32.mrb[1].mxu0  ;;  %v142_v32 = vadd.f32 %v141_v27, %v45_v24 }
  0xdd   :  { %v236_v30 = vadd.f32 %v727_v28, %v50_v26  ;;  %v230_v31 = vpop.f32.mrb[1].mxu1  ;;  %v144_v36 = vadd.f32 %v143_v29, %v45_v24 }
  0xde   :  { %v231_v33 = vadd.f32 %v230_v31, %v45_v24  ;;  %v249_v45 = vmax.f32 %v142_v32, 0.0 }
  0xdf   :  { %v254_v34 = vmax.f32 %v236_v30, 0.0  ;;  %v147_v37 = vpop.f32.mrb[2].mxu0  ;;  %v250_v49 = vmax.f32 %v144_v36, 0.0 }
  0xe0   :  { %v251_v38 = vmax.f32 %v231_v33, 0.0  ;;  %v148_v39 = vadd.f32 %v147_v37, %v50_v26  ;;  %v730_v40 = vpop.f32.mrb[2].mxu1  ;;  %v149_v41 = vpop.f32.mrb[3].mxu0 }
  0xe1   :  { %v246_v42 = vadd.f32 %v730_v40, %v60_v35  ;;  %v150_v43 = vadd.f32 %v149_v41, %v50_v26  ;;  %v240_v44 = vpop.f32.mrb[3].mxu1 }
  0xe2   :  { %v772_v46 = vpack.c.bf16 %v254_v34, %v251_v38  ;;  %v252_v47 = vmax.f32 %v148_v39, 0.0  ;;  %v241_v48 = vadd.f32 %v240_v44, %v55_v25  ;;  %v488_v38 = vld [vmem:[%s999_s5] sm:$0x1] }
  0xe3   :  { %v260_v50 = vmax.f32 %v246_v42, 0.0  ;;  %v253_v51 = vmax.f32 %v150_v43, 0.0  ;;  %v153_v52 = vpop.f32.mrb[4].mxu0 }
  0xe4   :  { %v766_v53 = vpack.c.bf16 %v252_v47, %v249_v45  ;;  %v257_v54 = vmax.f32 %v241_v48, 0.0  ;;  %773 = vmatprep.subr.bf16.mxu0 %v772_v46  ;;  %v155_v55 = vpop.f32.mrb[5].mxu0  ;;  %v154_v58 = vadd.f32 %v153_v52, %v55_v25 }
  0xe5   :  { %v764_v56 = vpack.c.bf16 %v253_v51, %v250_v49  ;;  %775 = vmatpush3.bf16.msra.mxu0 %v772_v46  ;;  %v156_v59 = vadd.f32 %v155_v55, %v55_v25 }
  0xe6   :  { %v776_v57 = vpack.c.bf16 %v260_v50, %v257_v54  ;;  %v255_v1 = vmax.f32 %v154_v58, 0.0 }
  0xe7   :  { %v159_v60 = vpop.f32.mrb[6].mxu0  ;;  %765 = vmatprep.subr.bf16.mxu1 %v764_v56  ;;  %v256_v4 = vmax.f32 %v156_v59, 0.0  ;;  %v490_v59 = vstv %s1000_s6  ;;  %s837_s6 = smov [#allocation3]  }
  0xe8   :  { %v160_v61 = vadd.f32 %v159_v60, %v60_v35  ;;  %777 = vmatprep.subr.bf16.mxu0 %v776_v57  ;;  %v161_v62 = vpop.f32.mrb[7].mxu0  ;;  %767 = vmatpush1.bf16.msra.mxu1 %v766_v53  ;;  %s676_s19 = sshll.u32 %s837_s6, 4  ;;  %s677_s19 = int_to_ptr.vmem [resolvable:$true] %s676_s19 }
  0xe9   :  { %v162_v63 = vadd.f32 %v161_v62, %v60_v35  ;;  %779 = vmatpush3.bf16.msra.mxu0 %v776_v57  ;;  %s808_s20 = scalar_lea.vmem %s677_s19, 48  ;;  %s812_s21 = scalar_lea.vmem %s677_s19, 64 }
  0xea   :  { %v258_v2 = vmax.f32 %v160_v61, 0.0  ;;  %p809_p0 = scmp.ne.s32.totalorder %s677_s19, %s808_s20  ;;  %p813_p1 = scmp.lt.s32.totalorder %s677_s19, %s677_s19 }
  0xeb   :  { %v259_v5 = vmax.f32 %v162_v63, 0.0  ;;  %p814_p2 = scmp.lt.s32.totalorder %s812_s21, %s808_s20 }
  0xec   :  { %v770_v6 = vpack.c.bf16 %v258_v2, %v255_v1  ;;  %740 = vmatmul.mubr.msk.f32.vlgmr.msra.gmra.mrb[8].mxu0 %vm289_vm1, %v262_v0  ;;  %v836_v1 = vmov 1966171168  }
  0xed   :  { %v768_v8 = vpack.c.bf16 %v259_v5, %v256_v4  ;;  %742 = vmatprep.mubr.msk.f32.mxu0 %vm289_vm1, %v263_v3  ;;  %v643_v2 = vunpack.c.l.s4 %v836_v1  ;;  %p815_p3 = por %p814_p2, %p813_p1 }
  0xef   :  { %769 = vmatprep.subr.bf16.mxu1 %v768_v8  ;;  %v644_v4 = vunpack.c.0.s8 %v643_v2  ;;  %p816_p4 = pnand %p815_p3, %p809_p0 }
  0xf0   :  { %743 = vmatmul.mubr.msk.f32.gmra.mrb[10].mxu0 %vm289_vm1, %v264_v9  ;;  %771 = vmatpush1.bf16.msra.mxu1 %v770_v6 }
  0xf1   :  { %558 = vmatprep.mubr.f32.mxu0 %v832_v7  ;;  %788 = vmatprep.subr.bf16.mxu1 %v834_v10 }
  0xf3   :  { %692 = vmatmul.mubr.msk.f32.vlgmr.msra.gmra.mrb[4].mxu1 %vm289_vm1, %v948_v23 }
  0xf4   :  { %372 = vmatprep.mubr.f32.mxu1 %v832_v7 }
  0xf7   :  { %693 = vmatmul.mubr.msk.f32.gmra.mrb[6].mxu1 %vm289_vm1, %v262_v0 }
  0xf8   :  { %378 = vmatprep.mubr.f32.mxu1 %v832_v7 }
  0xfb   :  { %694 = vmatmul.mubr.msk.f32.gmra.mrb[8].mxu1 %vm289_vm1, %v263_v3  ;;  %v645_v3 = vlaneseq }
  0xfc   :  { %384 = vmatprep.mubr.f32.mxu1 %v832_v7 }
  0xfd   :  { %v646_v5 = vshrl.u32 %v645_v3, 7  ;;  %vm667_vm3 = vcmp.lt.s32.totalorder %v645_v3, 384 }
  0xff   :  { %695 = vmatmul.mubr.msk.f32.gmra.mrb[10].mxu1 %vm289_vm1, %v264_v9  ;;  %v647_v6 = vsub.s32 %v644_v4, %v646_v5 }
 0x100   :  { %753 = vmatprep.mubr.msk.f32.mxu1 %vm835_vm2, %v832_v7 }
 0x1bf   :  { %v741_v13 = vpop.f32.mrb[8].mxu0 }
 0x1c0   :  { %v463_v14 = vadd.f32 %v741_v13, %v277_v11  ;;  %v457_v15 = vpop.f32.mrb[9].mxu0 }
 0x1c1   :  { %v458_v16 = vadd.f32 %v457_v15, %v272_v12 }
 0x1c2   :  { %v481_v17 = vmax.f32 %v463_v14, 0.0 }
 0x1c3   :  { %v478_v19 = vmax.f32 %v458_v16, 0.0  ;;  %v744_v20 = vpop.f32.mrb[10].mxu0 }
 0x1c4   :  { %v473_v22 = vadd.f32 %v744_v20, %v287_v18  ;;  %v467_v23 = vpop.f32.mrb[11].mxu0 }
 0x1c5   :  { %v789_v24 = vpack.c.bf16 %v481_v17, %v478_v19  ;;  %v468_v25 = vadd.f32 %v467_v23, %v282_v21 }
 0x1c6   :  { %v487_v26 = vmax.f32 %v473_v22, 0.0  ;;  %v368_v27 = vpop.f32.mrb[4].mxu1 }
 0x1c7   :  { %v484_v28 = vmax.f32 %v468_v25, 0.0  ;;  %790 = vmatpush3.bf16.msra.mxu1 %v789_v24  ;;  %v370_v7 = vpop.f32.mrb[5].mxu1  ;;  %v369_v30 = vadd.f32 %v368_v27, %v272_v12 }
 0x1c8   :  { %791 = vmatprep.subr.bf16.mxu1 %v834_v10  ;;  %v371_v31 = vadd.f32 %v370_v7, %v272_v12 }
 0x1c9   :  { %v792_v29 = vpack.c.bf16 %v487_v26, %v484_v28  ;;  %v476_v36 = vmax.f32 %v369_v30, 0.0 }
 0x1ca   :  { %v374_v32 = vpop.f32.mrb[6].mxu1  ;;  %v477_v39 = vmax.f32 %v371_v31, 0.0 }
 0x1cb   :  { %v375_v33 = vadd.f32 %v374_v32, %v277_v11  ;;  %793 = vmatpush3.bf16.msra.mxu1 %v792_v29  ;;  %v376_v34 = vpop.f32.mrb[7].mxu1 }
 0x1cc   :  { %v377_v35 = vadd.f32 %v376_v34, %v277_v11 }
 0x1cd   :  { %v479_v37 = vmax.f32 %v375_v33, 0.0 }
 0x1ce   :  { %v480_v40 = vmax.f32 %v377_v35, 0.0  ;;  %v380_v41 = vpop.f32.mrb[8].mxu1  ;;  %754 = vmatmul.mubr.msk.f32.vlgmr.msra.gmra.mrb[12].mxu1 %vm289_vm1, %v488_v38 }
 0x1cf   :  { %v782_v42 = vpack.c.bf16 %v479_v37, %v476_v36  ;;  %v382_v43 = vpop.f32.mrb[9].mxu1  ;;  %v381_v45 = vadd.f32 %v380_v41, %v282_v21 }
 0x1d0   :  { %v780_v44 = vpack.c.bf16 %v480_v40, %v477_v39  ;;  %v383_v46 = vadd.f32 %v382_v43, %v282_v21 }
 0x1d1   :  { %v482_v51 = vmax.f32 %v381_v45, 0.0 }
 0x1d2   :  { %v386_v47 = vpop.f32.mrb[10].mxu1  ;;  %781 = vmatprep.subr.bf16.mxu0 %v780_v44  ;;  %v483_v53 = vmax.f32 %v383_v46, 0.0 }
 0x1d3   :  { %v387_v48 = vadd.f32 %v386_v47, %v287_v18  ;;  %v388_v49 = vpop.f32.mrb[11].mxu1  ;;  %783 = vmatpush1.bf16.msra.mxu0 %v782_v42 }
 0x1d4   :  { %v389_v50 = vadd.f32 %v388_v49, %v287_v18 }
 0x1d5   :  { %v485_v52 = vmax.f32 %v387_v48, 0.0 }
 0x1d6   :  { %v486_v54 = vmax.f32 %v389_v50, 0.0 }
 0x1d7   :  { %v786_v55 = vpack.c.bf16 %v485_v52, %v482_v51 }
 0x1d8   :  { %v784_v56 = vpack.c.bf16 %v486_v54, %v483_v53 }
 0x1da   :  { %785 = vmatprep.subr.bf16.mxu0 %v784_v56 }
 0x1db   :  { %787 = vmatpush1.bf16.msra.mxu0 %v786_v55 }
 0x1de   :  { %700 = vmatmul.mubr.msk.f32.vlgmr.msra.gmra.mrb[12].mxu0 %vm289_vm1, %v488_v38 }
 0x2a1   :  { %v631_v57 = vpop.f32.mrb[12].mxu1 }
 0x2a2   :  { %v755_v58 = vpop.f32.mrb[13].mxu1  ;;  %v632_v60 = vadd.f32 %v631_v57, %v490_v59 }
 0x2a4   :  { %802 = vtanh.f32 %v632_v60 }
 0x2ae   :  { %v803_v8 = vpop.eup %802 }
 0x2af   :  { %v655_v12 = vrot.slane %v803_v8, %v647_v6 }
 0x2b1   :  { %v560_v61 = vpop.f32.mrb[12].mxu0 }
 0x2b2   :  { %v561_v62 = vadd.f32 %v560_v61, %v490_v59  ;;  %v562_v63 = vpop.f32.mrb[13].mxu0 }
 0x2b3   :  { %v563_v0 = vadd.f32 %v562_v63, %v490_v59 }
 0x2b4   :  { %804 = vtanh.f32 %v561_v62 }
 0x2b5   :  { %806 = vtanh.f32 %v563_v0 }
 0x2be   :  { %v805_v9 = vpop.eup %804 }
 0x2bf   :  { %v807_v10 = vpop.eup %806 }
 0x2c0   :  { %v641_v11 = vcombine.low %v805_v9, %v807_v10 }
 0x2c2   :  { %v648_v13 = vrot.slane %v641_v11, %v647_v6 }
 0x2c4   :  { %v656_v14 = vcombine.low %v648_v13, %v655_v12 }
 0x2c6   :  { %v663_v15 = vrot.slane %v656_v14, %v647_v6 }
 0x2c8   :  { %669 = vst.msk [vmem:[#allocation3] sm:$0x7] %vm667_vm3, %v663_v15 }
 0x2c9   :  { %819 = shalt.err (!%p816_p4)
}
 0x2ca   :  { %s820_s24 = scalar_lea.hbm %s1001_s7, 48 }
 0x2cb   :  { %p821_p5 = scmp.ne.s32.totalorder %s1001_s7, %s820_s24  ;;  %p824_p6 = scmp.lt.u32.totalorder %s820_s24, %s1001_s7 }
 0x2cd   :  { %p826_p7 = pnand %p824_p6, %p821_p5 }
 0x2cf   :  { %829 = shalt.err (!%p826_p7)
}
 0x2d0   :  { %679 = dma.vmem_to_hbm [thread:$0]  %s677_s19, 48, %s1001_s7, [#allocation4]  }
 0x2d1   :  { %830 = dma.done.wait [#allocation4], 48  }
 0x2d2   :  { %831 = vsyncadd [#allocation4], 4294967248 }
 0x2d3   :  { %683 = vsyncpa [#allocation4], 1 }

</bundles_post_ra>
